<compile_context>
chip_gen: v7x
topology: tpu7x:2x2x1
jax: 0.10.0
libtpu: 0.0.40
codegen_flags: <defaults>
</compile_context>

<pallas_src>
import jax
import jax.numpy as jnp
from jax.experimental import pallas as pl
from jax.experimental.pallas import tpu as pltpu

_LANE = 128       # TPU lane width (last-dim vreg extent)
_TB_CAP = 32768   # samples per grid step; ~4 MiB VMEM with double buffering


def _round_up(x, m):
    return pl.cdiv(x, m) * m


def linear_tn_kernel(w_ref, b_ref, xT_ref, oT_ref):
    """Feature-major linear: oT[n, :] = sum_k w[n, k] * xT[k, :] + b[n].

    w_ref : SMEM (N, K) f32 -- nn.Linear weight, read as scalars
    b_ref : SMEM (N,)   f32 -- nn.Linear bias
    xT_ref: VMEM (K, TB) f32 -- lane-dense input tile (batch in lanes)
    oT_ref: VMEM (N, TB) f32 -- lane-dense output tile
    """
    n_out, k_in = w_ref.shape
    # Hoist the K lane-dense row loads; reuse them across all output rows.
    xrows = [xT_ref[k:k + 1, :] for k in range(k_in)]
    for n in range(n_out):                      # unrolled: N == 2
        acc = xrows[0] * w_ref[n, 0]            # pure VPU FMA chain (no MXU)
        for k in range(1, k_in):                # unrolled: K == 4
            acc = acc + xrows[k] * w_ref[n, k]
        oT_ref[n:n + 1, :] = acc + b_ref[n]     # lane-dense store, row n


def nn_forward(x, weight, bias, *, tb_cap=_TB_CAP):
    """Equivalent of NN.forward: cast to f32, flatten, Linear(4, 2).

    x:      (B, ...) with prod(...) == 4
    weight: (2, 4)  -- nn.Linear(4, 2) weight
    bias:   (2,)    -- nn.Linear(4, 2) bias
    returns (B, 2) float32
    """
    x = jnp.asarray(x, jnp.float32)
    B = x.shape[0]
    x2d = x.reshape(B, -1)                      # view(B, -1)
    w = jnp.asarray(weight, jnp.float32)        # (N, K) = (2, 4)
    b = jnp.asarray(bias, jnp.float32)          # (N,)   = (2,)
    N, K = w.shape
    assert x2d.shape[1] == K, "fc1 expects 4 input features"

    # NOTE: at tiny B the ~1-2 us pallas_call launch/DMA-setup cost dwarfs the
    # 16*B FLOPs; production code should let XLA fuse `x2d @ w.T + b` there and
    # keep this kernel for the large-batch regime.

    # Lane-dense tiling over the batch.
    TB = min(tb_cap, _round_up(B, _LANE))       # multiple of 128
    B_pad = _round_up(B, TB)
    grid = (B_pad // TB,)

    xT = x2d.T                                  # (K, B) -- layout plumbing in XLA
    if B_pad != B:
        xT = jnp.pad(xT, ((0, 0), (0, B_pad - B)))

    outT = pl.pallas_call(
        linear_tn_kernel,
        out_shape=jax.ShapeDtypeStruct((N, B_pad), jnp.float32),
        grid=grid,
        in_specs=[
            # Tiny weight/bias: resident in SMEM for the whole call, consumed
            # as scalars -> no per-step re-DMA, no in-loop broadcasts of VMEM.
            pl.BlockSpec(memory_space=pltpu.MemorySpace.SMEM),
            pl.BlockSpec(memory_space=pltpu.MemorySpace.SMEM),
            # Batch-tiled, auto double-buffered input: (K, TB), TB % 128 == 0.
            pl.BlockSpec((K, TB), lambda i: (0, i)),
        ],
        out_specs=pl.BlockSpec((N, TB), lambda i: (0, i)),
        compiler_params=pltpu.CompilerParams(
            # Batch tiles are independent -> megacore / v7x dual-TC sharding.
            dimension_semantics=("parallel",),
        ),
    )(w, b, xT)

    return outT[:, :B].T                        # back to (B, 2)


if __name__ == "__main__":
    key = jax.random.PRNGKey(0)
    k_x, k_w, k_b, k_x2 = jax.random.split(key, 4)

    # Deterministic nn.Linear(4, 2)-style params: U(-1/sqrt(4), 1/sqrt(4)).
    bound = 1.0 / (4.0 ** 0.5)
    weight = jax.random.uniform(k_w, (2, 4), jnp.float32, -bound, bound)
    bias = jax.random.uniform(k_b, (2,), jnp.float32, -bound, bound)

    # Small input consistent with the module: (B, 2, 2) flattens to (B, 4).
    B = 2
    x = jax.random.normal(k_x, (B, 2, 2), dtype=jnp.float32)
    out = jax.block_until_ready(nn_forward(x, weight, bias))
    ref = x.reshape(B, -1) @ weight.T + bias
    assert out.shape == (B, 2)
    assert jnp.allclose(out, ref, atol=1e-5), "mismatch vs reference (B=2)"

    # Exercise the tiled + padded path (multiple grid steps, B not a multiple
    # of the tile) with a small tile cap so the grid has > 1 step.
    B2 = 300
    x2 = jax.random.normal(k_x2, (B2, 4), dtype=jnp.float32)
    out2 = jax.block_until_ready(nn_forward(x2, weight, bias, tb_cap=128))
    ref2 = x2 @ weight.T + bias
    assert out2.shape == (B2, 2)
    assert jnp.allclose(out2, ref2, atol=1e-5), "mismatch vs reference (B=300)"

    print("KERNEL_OK")
</pallas_src>

<mosaic_0001>
module attributes {stable_mosaic.version = 11 : i64} {
  func.func @linear_tn_kernel(%arg0: i32, %arg1: memref<2x4xf32, #tpu.memory_space<smem>>, %arg2: memref<2xf32, #tpu.memory_space<smem>>, %arg3: memref<4x128xf32, #tpu.memory_space<vmem>>, %arg4: memref<2x128xf32, #tpu.memory_space<vmem>>) attributes {dimension_semantics = [#tpu.dimension_semantics<parallel>], iteration_bounds = array<i64: 1>, scalar_prefetch = 0 : i64, scratch_operands = 0 : i64, tpu.core_type = #tpu.core_type<tc>, window_params = [{transform_indices = @transform_0, window_bounds = array<i64: 2, 4>}, {transform_indices = @transform_1, window_bounds = array<i64: 2>}, {transform_indices = @transform_2, window_bounds = array<i64: 4, 128>}, {transform_indices = @transform_3, window_bounds = array<i64: 2, 128>}]} {
    %c0 = arith.constant 0 : index
    %c0_0 = arith.constant 0 : index
    %0 = vector.load %arg3[%c0, %c0_0] : memref<4x128xf32, #tpu.memory_space<vmem>>, vector<1x128xf32>
    %c1 = arith.constant 1 : index
    %c0_1 = arith.constant 0 : index
    %1 = vector.load %arg3[%c1, %c0_1] : memref<4x128xf32, #tpu.memory_space<vmem>>, vector<1x128xf32>
    %c2 = arith.constant 2 : index
    %c0_2 = arith.constant 0 : index
    %2 = vector.load %arg3[%c2, %c0_2] : memref<4x128xf32, #tpu.memory_space<vmem>>, vector<1x128xf32>
    %c3 = arith.constant 3 : index
    %c0_3 = arith.constant 0 : index
    %3 = vector.load %arg3[%c3, %c0_3] : memref<4x128xf32, #tpu.memory_space<vmem>>, vector<1x128xf32>
    %c0_4 = arith.constant 0 : index
    %c0_5 = arith.constant 0 : index
    %4 = memref.load %arg1[%c0_4, %c0_5] : memref<2x4xf32, #tpu.memory_space<smem>>
    %5 = vector.broadcast %4 : f32 to vector<1x128xf32>
    %6 = arith.mulf %0, %5 : vector<1x128xf32>
    %c0_6 = arith.constant 0 : index
    %c1_7 = arith.constant 1 : index
    %7 = memref.load %arg1[%c0_6, %c1_7] : memref<2x4xf32, #tpu.memory_space<smem>>
    %8 = vector.broadcast %7 : f32 to vector<1x128xf32>
    %9 = arith.mulf %1, %8 : vector<1x128xf32>
    %10 = arith.addf %6, %9 : vector<1x128xf32>
    %c0_8 = arith.constant 0 : index
    %c2_9 = arith.constant 2 : index
    %11 = memref.load %arg1[%c0_8, %c2_9] : memref<2x4xf32, #tpu.memory_space<smem>>
    %12 = vector.broadcast %11 : f32 to vector<1x128xf32>
    %13 = arith.mulf %2, %12 : vector<1x128xf32>
    %14 = arith.addf %10, %13 : vector<1x128xf32>
    %c0_10 = arith.constant 0 : index
    %c3_11 = arith.constant 3 : index
    %15 = memref.load %arg1[%c0_10, %c3_11] : memref<2x4xf32, #tpu.memory_space<smem>>
    %16 = vector.broadcast %15 : f32 to vector<1x128xf32>
    %17 = arith.mulf %3, %16 : vector<1x128xf32>
    %18 = arith.addf %14, %17 : vector<1x128xf32>
    %c0_12 = arith.constant 0 : index
    %19 = memref.load %arg2[%c0_12] : memref<2xf32, #tpu.memory_space<smem>>
    %20 = vector.broadcast %19 : f32 to vector<1x128xf32>
    %21 = arith.addf %18, %20 : vector<1x128xf32>
    %c0_13 = arith.constant 0 : index
    %c0_14 = arith.constant 0 : index
    %22 = vector.load %arg4[%c0_13, %c0_14] : memref<2x128xf32, #tpu.memory_space<vmem>>, vector<1x128xf32>
    tpu.vector_store %arg4[%c0_13, %c0_14], %21 {strides = array<i32>} : memref<2x128xf32, #tpu.memory_space<vmem>>, vector<1x128xf32>,
    %c1_15 = arith.constant 1 : index
    %c0_16 = arith.constant 0 : index
    %23 = memref.load %arg1[%c1_15, %c0_16] : memref<2x4xf32, #tpu.memory_space<smem>>
    %24 = vector.broadcast %23 : f32 to vector<1x128xf32>
    %25 = arith.mulf %0, %24 : vector<1x128xf32>
    %c1_17 = arith.constant 1 : index
    %c1_18 = arith.constant 1 : index
    %26 = memref.load %arg1[%c1_17, %c1_18] : memref<2x4xf32, #tpu.memory_space<smem>>
    %27 = vector.broadcast %26 : f32 to vector<1x128xf32>
    %28 = arith.mulf %1, %27 : vector<1x128xf32>
    %29 = arith.addf %25, %28 : vector<1x128xf32>
    %c1_19 = arith.constant 1 : index
    %c2_20 = arith.constant 2 : index
    %30 = memref.load %arg1[%c1_19, %c2_20] : memref<2x4xf32, #tpu.memory_space<smem>>
    %31 = vector.broadcast %30 : f32 to vector<1x128xf32>
    %32 = arith.mulf %2, %31 : vector<1x128xf32>
    %33 = arith.addf %29, %32 : vector<1x128xf32>
    %c1_21 = arith.constant 1 : index
    %c3_22 = arith.constant 3 : index
    %34 = memref.load %arg1[%c1_21, %c3_22] : memref<2x4xf32, #tpu.memory_space<smem>>
    %35 = vector.broadcast %34 : f32 to vector<1x128xf32>
    %36 = arith.mulf %3, %35 : vector<1x128xf32>
    %37 = arith.addf %33, %36 : vector<1x128xf32>
    %c1_23 = arith.constant 1 : index
    %38 = memref.load %arg2[%c1_23] : memref<2xf32, #tpu.memory_space<smem>>
    %39 = vector.broadcast %38 : f32 to vector<1x128xf32>
    %40 = arith.addf %37, %39 : vector<1x128xf32>
    %c1_24 = arith.constant 1 : index
    %c0_25 = arith.constant 0 : index
    %41 = vector.load %arg4[%c1_24, %c0_25] : memref<2x128xf32, #tpu.memory_space<vmem>>, vector<1x128xf32>
    tpu.vector_store %arg4[%c1_24, %c0_25], %40 {strides = array<i32>} : memref<2x128xf32, #tpu.memory_space<vmem>>, vector<1x128xf32>,
    return
  }
  func.func @transform_0(%arg0: i32) -> (i32, i32) {
    %c0_i32 = arith.constant 0 : i32
    %c0_i32_0 = arith.constant 0 : i32
    %c0_i32_1 = arith.constant 0 : i32
    return %c0_i32, %c0_i32_0 : i32, i32
  }
  func.func @transform_1(%arg0: i32) -> i32 {
    %c0_i32 = arith.constant 0 : i32
    %c0_i32_0 = arith.constant 0 : i32
    return %c0_i32 : i32
  }
  func.func @transform_2(%arg0: i32) -> (i32, i32) {
    %c0_i32 = arith.constant 0 : i32
    %c0_i32_0 = arith.constant 0 : i32
    return %c0_i32, %arg0 : i32, i32
  }
  func.func @transform_3(%arg0: i32) -> (i32, i32) {
    %c0_i32 = arith.constant 0 : i32
    %c0_i32_0 = arith.constant 0 : i32
    return %c0_i32, %arg0 : i32, i32
  }
}

</mosaic_0001>

<bundles_post_ra>
// kernel: tpu_custom_call.1
= control target key start
LH: loop header
LB: loop body
LE: loop exit
PB: predicated region body
PF: predicated region fallthrough
CT: control target
= control target key end

     0   :  { %8 = vsyncpa [#allocation4], 0  ;;  %s219_s0 = inlined_call_operand.hbm [shape: f32[2,4], index: 0, kind: input, shape index: {}]   ;;  %s220_s1 = inlined_call_operand.vmem [shape: f32[2], index: 1, kind: input, shape index: {}]   ;;  %s221_s2 = inlined_call_operand.vmem [shape: f32[4,128], index: 2, kind: input, shape index: {}]   ;;  %s222_s3 = inlined_call_operand.hbm [shape: f32[2,128], index: 3, kind: output, shape index: {}]  }
   0x1   :  { %9 = vsyncpa [#allocation5], 0 }
   0x2   :  { %10 = vsyncpa [#allocation3], 0  ;;  %s25_s14 = sshll.u32 %s220_s1, 4  ;;  %s107_s17 = scalar_lea.hbm %s219_s0, 32  ;;  %s26_s14 = int_to_ptr.vmem [resolvable:$true] %s25_s14 }
   0x3   :  { %p108_p0 = scmp.ne.s32.totalorder %s219_s0, %s107_s17  ;;  %p111_p1 = scmp.lt.u32.totalorder %s107_s17, %s219_s0 }
   0x5   :  { %p113_p2 = pnand %p111_p1, %p108_p0 }
   0x7   :  { %116 = shalt.err (!%p113_p2)
}
   0x8   :  { %s157_s22 = smov [#allocation2]   ;;  %s117_s1 = scalar_lea.vmem %s26_s14, 16 }
   0x9   :  { %18 = dma.hbm_to_smem %s219_s0, 32, %s157_s22, [#allocation4]  }
   0xa   :  { %p118_p3 = scmp.ne.s32.totalorder %s26_s14, %s117_s1  ;;  %p122_p4 = scmp.lt.s32.totalorder %s26_s14, %s26_s14 }
   0xb   :  { %p123_p5 = scmp.lt.s32.totalorder %s117_s1, %s117_s1 }
   0xd   :  { %p124_p6 = por %p123_p5, %p122_p4 }
   0xf   :  { %p125_p7 = pnand %p124_p6, %p118_p3 }
  0x11   :  { %128 = shalt.err (!%p125_p7)
}
  0x12   :  { %s158_s25 = smov [#allocation6]  }
  0x13   :  { %28 = dma.vmem_to_smem %s26_s14, 16, %s158_s25, [#allocation5]  }
  0x14   :  { %151 = dma.done.wait [#allocation4], 32  }
  0x15   :  { %152 = vsyncadd [#allocation4], 4294967264 }
  0x16   :  { %153 = dma.done.wait [#allocation5], 16  }
  0x17   :  { %154 = vsyncadd [#allocation5], 4294967280 }
  0x18   :  { %37 = sfence }
  0x19   :  { %s42_s26 = sld [smem:[#allocation2]]  ;;  %s96_s27 = sld [smem:[#allocation2 + $0x1]]  ;;  %v38_v0 = vld [vmem:[%s221_s2] sm:$0x1]  ;;  %v39_v1 = vld [vmem:[%s221_s2 + $0x1] sm:$0x1] }
  0x1a   :  { %s97_s28 = sld [smem:[#allocation2 + $0x2]]  ;;  %s98_s29 = sld [smem:[#allocation2 + $0x3]]  ;;  %v40_v2 = vld [vmem:[%s221_s2 + $0x2] sm:$0x1]  ;;  %v41_v3 = vld [vmem:[%s221_s2 + $0x3] sm:$0x1] }
  0x1b   :  { %s99_s0 = sld [smem:[#allocation2 + $0x80]]  ;;  %s100_s5 = sld [smem:[#allocation2 + $0x81]] }
  0x1c   :  { %s101_s6 = sld [smem:[#allocation2 + $0x82]]  ;;  %s57_s9 = sld [smem:[#allocation6]] }
  0x1d   :  { %s102_s10 = sld [smem:[#allocation2 + $0x83]]  ;;  %s103_s15 = sld [smem:[#allocation6 + $0x1]] }
  0x1e   :  { %s159_s2 = smov [#allocation7]  }
  0x1f   :  { %v43_v4 = vstv %s42_s26  ;;  %v46_v5 = vstv %s96_s27  ;;  %s86_s16 = sshll.u32 %s159_s2, 4  ;;  %s87_s16 = int_to_ptr.vmem [resolvable:$true] %s86_s16 }
  0x20   :  { %v44_v6 = vmul.f32 %v43_v4, %v38_v0  ;;  %v47_v7 = vmul.f32 %v46_v5, %v39_v1  ;;  %v50_v8 = vstv %s97_s28  ;;  %v54_v9 = vstv %s98_s29  ;;  %s129_s17 = scalar_lea.vmem %s87_s16, 32  ;;  %p134_p9 = scmp.lt.s32.totalorder %s87_s16, %s87_s16 }
  0x21   :  { %v51_v10 = vmul.f32 %v50_v8, %v40_v2  ;;  %v55_v11 = vmul.f32 %v54_v9, %v41_v3  ;;  %v62_v12 = vstv %s99_s0  ;;  %v65_v15 = vstv %s100_s5  ;;  %p130_p8 = scmp.ne.s32.totalorder %s87_s16, %s129_s17  ;;  %p135_p10 = scmp.lt.s32.totalorder %s129_s17, %s129_s17 }
  0x22   :  { %v48_v13 = vadd.f32 %v47_v7, %v44_v6  ;;  %v63_v14 = vmul.f32 %v62_v12, %v38_v0  ;;  %v69_v16 = vstv %s101_s6  ;;  %v66_v17 = vmul.f32 %v65_v15, %v39_v1 }
  0x23   :  { %v70_v18 = vmul.f32 %v69_v16, %v40_v2  ;;  %v73_v19 = vstv %s102_s10  ;;  %v58_v21 = vstv %s57_s9  ;;  %v77_v27 = vstv %s103_s15  ;;  %p136_p11 = por %p135_p10, %p134_p9 }
  0x24   :  { %v52_v20 = vadd.f32 %v51_v10, %v48_v13  ;;  %v67_v22 = vadd.f32 %v66_v17, %v63_v14  ;;  %v74_v23 = vmul.f32 %v73_v19, %v41_v3 }
  0x25   :  { %p137_p12 = pnand %p136_p11, %p130_p8 }
  0x26   :  { %v56_v24 = vadd.f32 %v55_v11, %v52_v20  ;;  %v71_v25 = vadd.f32 %v70_v18, %v67_v22 }
  0x28   :  { %v59_v26 = vadd.f32 %v58_v21, %v56_v24  ;;  %v75_v28 = vadd.f32 %v74_v23, %v71_v25 }
  0x2a   :  { %60 = vst [vmem:[#allocation7] sm:$0x1] %v59_v26  ;;  %v78_v29 = vadd.f32 %v77_v27, %v75_v28 }
  0x2c   :  { %79 = vst [vmem:[#allocation7 + $0x1] sm:$0x1] %v78_v29 }
  0x2d   :  { %140 = shalt.err (!%p137_p12)
}
  0x2e   :  { %s141_s20 = scalar_lea.hbm %s222_s3, 32 }
  0x2f   :  { %p142_p13 = scmp.ne.s32.totalorder %s222_s3, %s141_s20  ;;  %p145_p0 = scmp.lt.u32.totalorder %s141_s20, %s222_s3 }
  0x31   :  { %p147_p1 = pnand %p145_p0, %p142_p13 }
  0x33   :  { %150 = shalt.err (!%p147_p1)
}
  0x34   :  { %89 = dma.vmem_to_hbm [thread:$0]  %s87_s16, 32, %s222_s3, [#allocation3]  }
  0x35   :  { %155 = dma.done.wait [#allocation3], 32  }
  0x36   :  { %156 = vsyncadd [#allocation3], 4294967264 }
  0x37   :  { %93 = vsyncpa [#allocation3], 1 }
  0x38   :  { %94 = vsyncpa [#allocation4], 1 }
  0x39   :  { %95 = vsyncpa [#allocation5], 1 }

</bundles_post_ra>
